<compile_context>
chip_gen: v7x
topology: tpu7x:2x2x1
jax: 0.10.0
libtpu: 0.0.40
codegen_flags: <defaults>
</compile_context>

<pallas_src>
import math

import jax
import jax.numpy as jnp
from jax.experimental import pallas as pl
from jax.experimental.pallas import tpu as pltpu


def _round_up(v, m):
    return (v + m - 1) // m * m


# ----------------------------------------------------------------------------
# Tiled Linear kernel:  y = x @ W + b   (MXU matmul, f32 accumulator)
# ----------------------------------------------------------------------------
def _linear_kernel(a_ref, w_ref, b_ref, o_ref, acc_ref):
    @pl.when(pl.program_id(2) == 0)
    def _():
        acc_ref[...] = jnp.zeros(acc_ref.shape, jnp.float32)

    # Native-dtype operands (bf16 stays bf16 -> full MXU rate), f32 accumulation.
    acc_ref[...] += jnp.dot(a_ref[...], w_ref[...],
                            preferred_element_type=jnp.float32)

    @pl.when(pl.program_id(2) == pl.num_programs(2) - 1)
    def _():
        o_ref[...] = (acc_ref[...] + b_ref[...]).astype(o_ref.dtype)


def _linear_dims(K, N, tk_max=512, tn_max=512):
    """Pick K/N tiles.  Full-dim blocks are always layout-legal; otherwise use
    128-aligned tiles and pad the weight once (at init)."""
    if K <= tk_max:
        tk, Kp = K, K
    else:
        tk, Kp = tk_max, _round_up(K, tk_max)
    if N <= tn_max:
        tn, Np = N, N
    else:
        tn, Np = tn_max, _round_up(N, tn_max)
    return tk, tn, Kp, Np


def prep_linear_weights(w, b=None, *, tk_max=512, tn_max=512):
    """Pad weight/bias ONCE (hoisted out of the forward hot path)."""
    K, N = w.shape
    _, _, Kp, Np = _linear_dims(K, N, tk_max, tn_max)
    w_p = jnp.pad(w, ((0, Kp - K), (0, Np - N))) if (Kp != K or Np != N) else w
    b_full = jnp.zeros((N,), w.dtype) if b is None else b.astype(w.dtype)
    b_p = jnp.pad(b_full, (0, Np - N)).reshape(1, Np)
    return w_p, b_p, N


def linear_pallas(a, w_p, b_p, n_out, *, tm_max=512, tk_max=512, tn_max=512):
    """a: [M, K], w_p: [Kp, Np] (pre-padded), b_p: [1, Np]  ->  [M, n_out]."""
    M, K = a.shape
    Kp, Np = w_p.shape
    tk = Kp if Kp <= tk_max else tk_max
    tn = Np if Np <= tn_max else tn_max
    tm = min(tm_max, _round_up(M, 8))
    Mp = _round_up(M, tm)
    if Mp != M or Kp != K:
        a = jnp.pad(a, ((0, Mp - M), (0, Kp - K)))

    out = pl.pallas_call(
        _linear_kernel,
        out_shape=jax.ShapeDtypeStruct((Mp, Np), a.dtype),
        grid_spec=pltpu.PrefetchScalarGridSpec(
            num_scalar_prefetch=0,
            grid=(Mp // tm, Np // tn, Kp // tk),
            in_specs=[
                pl.BlockSpec((tm, tk), lambda i, j, k: (i, k)),
                pl.BlockSpec((tk, tn), lambda i, j, k: (k, j)),
                pl.BlockSpec((1, tn), lambda i, j, k: (0, j)),
            ],
            out_specs=pl.BlockSpec((tm, tn), lambda i, j, k: (i, j)),
            scratch_shapes=[pltpu.VMEM((tm, tn), jnp.float32)],
        ),
        compiler_params=pltpu.CompilerParams(
            dimension_semantics=("parallel", "parallel", "arbitrary")),
    )(a, w_p, b_p)
    if Mp != M or Np != n_out:
        out = out[:M, :n_out]
    return out


# ----------------------------------------------------------------------------
# Fused attention core: softmax(q k^T * scale) @ v with online softmax.
# Reads q/k/v directly from the packed [B, S, 3*H*D] qkv tensor (no transposes),
# processes `hp` heads per block (hp*D is a multiple of 128 lanes).
# ----------------------------------------------------------------------------
def _make_attn_kernel(scale, seq_len, tkv, hp, D, needs_mask):
    def kernel(q_ref, k_ref, v_ref, o_ref, q_sc, m_sc, l_sc, acc_sc):
        ki = pl.program_id(3)

        @pl.when(ki == 0)
        def _():
            # q block is resident across the kv axis: stage scale*q once, so the
            # multiply / reload is not re-executed every kv step.
            q_sc[...] = q_ref[...] * scale
            m_sc[...] = jnp.full(m_sc.shape, -jnp.inf, jnp.float32)
            l_sc[...] = jnp.zeros(l_sc.shape, jnp.float32)
            acc_sc[...] = jnp.zeros(acc_sc.shape, jnp.float32)

        if needs_mask:  # only traced when the sequence is zero-padded
            col = jax.lax.broadcasted_iota(jnp.int32, (q_sc.shape[0], tkv), 1) + ki * tkv
            valid = col < seq_len

        for h in range(hp):  # static unroll over the heads packed in this block
            sl = slice(h * D, (h + 1) * D)
            s = jax.lax.dot_general(                      # (tq, tkv) = q_h @ k_h^T
                q_sc[:, sl], k_ref[:, sl],
                (((1,), (1,)), ((), ())),
                preferred_element_type=jnp.float32)
            if needs_mask:
                s = jnp.where(valid, s, -1e30)
            m_prev = m_sc[h]
            m_new = jnp.maximum(m_prev, jnp.max(s, axis=-1, keepdims=True))
            alpha = jnp.exp(m_prev - m_new)
            p = jnp.exp(s - m_new)
            l_sc[h] = alpha * l_sc[h] + jnp.sum(p, axis=-1, keepdims=True)
            acc_sc[h] = alpha * acc_sc[h] + jnp.dot(
                p.astype(v_ref.dtype), v_ref[:, sl],
                preferred_element_type=jnp.float32)
            m_sc[h] = m_new

        @pl.when(ki == pl.num_programs(3) - 1)
        def _():
            parts = [acc_sc[h] * pl.reciprocal(l_sc[h], approx=True)
                     for h in range(hp)]
            # single lane-dense (tq, hp*D) store
            o_ref[...] = jnp.concatenate(parts, axis=-1).astype(o_ref.dtype)

    return kernel


def attention_core_pallas(qkv, heads, head_dim, scale, *, tq_max=128, tkv_max=256):
    """qkv: [B, S, 3*H*D] (torch layout: q heads | k heads | v heads, each head a
    contiguous D chunk).  Returns merged per-head attention output [B, S, H*D]."""
    B, S, three_inner = qkv.shape
    H, D = heads, head_dim
    assert three_inner == 3 * H * D

    # Pack enough heads per block to make the lane width a multiple of 128.
    hp = 128 // math.gcd(D, 128)
    if H % hp != 0:
        if (H * D) % 128 == 0:
            hp = H
        else:
            # TODO(synk): lane packing not expressible for this (heads, head_dim).
            raise NotImplementedError("unsupported (heads, head_dim) combination")
    HB = H // hp
    hpD = hp * D

    # tkv=256 fills the 256-wide MXU on v6e/v7x; tq=128 keeps the score tile modest.
    tq = min(tq_max, _round_up(S, 8))
    tkv = min(tkv_max, _round_up(S, 8))
    step = (tq * tkv) // math.gcd(tq, tkv)
    Sp = _round_up(S, step)
    if Sp != S:
        qkv = jnp.pad(qkv, ((0, 0), (0, Sp - S), (0, 0)))

    kernel = _make_attn_kernel(scale, S, tkv, hp, D, Sp != S)
    out = pl.pallas_call(
        kernel,
        out_shape=jax.ShapeDtypeStruct((B, Sp, H * D), qkv.dtype),
        grid_spec=pltpu.PrefetchScalarGridSpec(
            num_scalar_prefetch=0,
            grid=(B, HB, Sp // tq, Sp // tkv),
            in_specs=[  # same qkv array indexed three ways (q / k / v column blocks)
                pl.BlockSpec((None, tq, hpD), lambda b, g, qi, ki: (b, qi, g)),
                pl.BlockSpec((None, tkv, hpD), lambda b, g, qi, ki: (b, ki, HB + g)),
                pl.BlockSpec((None, tkv, hpD), lambda b, g, qi, ki: (b, ki, 2 * HB + g)),
            ],
            out_specs=pl.BlockSpec((None, tq, hpD), lambda b, g, qi, ki: (b, qi, g)),
            scratch_shapes=[
                pltpu.VMEM((tq, hpD), qkv.dtype),       # scaled q (staged at ki==0)
                pltpu.VMEM((hp, tq, 1), jnp.float32),   # running max (per head)
                pltpu.VMEM((hp, tq, 1), jnp.float32),   # running denom (per head)
                pltpu.VMEM((hp, tq, D), jnp.float32),   # output accumulator (per head)
            ],
        ),
        compiler_params=pltpu.CompilerParams(
            dimension_semantics=("parallel", "parallel", "parallel", "arbitrary")),
    )(qkv, qkv, qkv)
    return out[:, :S, :] if Sp != S else out


# ----------------------------------------------------------------------------
# Attention module (forward-pass semantics of the PyTorch module)
# ----------------------------------------------------------------------------
class AttentionPallas:
    def __init__(self, dim, heads=8, head_dim=64, dropout=0.0, *, key):
        inner_dim = head_dim * heads
        self.dim = dim
        self.heads = heads
        self.head_dim = head_dim
        self.scale = head_dim ** (-0.5)
        self.project_out = not (heads == 1 and head_dim == dim)
        k_qkv, k_out = jax.random.split(key)
        # Deterministic weights (stored as W.T relative to torch's [out, in]).
        self.w_qkv = (jax.random.normal(k_qkv, (dim, inner_dim * 3), jnp.float32)
                      * dim ** (-0.5))
        # Weight padding / bias layout hoisted out of the forward hot path.
        self.w_qkv_p, self.b_qkv_p, self.n_qkv = prep_linear_weights(self.w_qkv)
        if self.project_out:
            self.w_out = (jax.random.normal(k_out, (inner_dim, dim), jnp.float32)
                          * inner_dim ** (-0.5))
            self.b_out = jnp.zeros((dim,), jnp.float32)
            self.w_out_p, self.b_out_p, self.n_out = prep_linear_weights(
                self.w_out, self.b_out)
        else:
            self.w_out, self.b_out = None, None
        # TODO(synk): nn.Dropout(p=dropout) omitted — identity for p=0.0 / inference.

    def __call__(self, x):
        B, S, dim = x.shape
        H, D = self.heads, self.head_dim
        inner = H * D

        qkv = linear_pallas(x.reshape(B * S, dim), self.w_qkv_p, self.b_qkv_p,
                            self.n_qkv)                       # [B*S, 3*inner]
        qkv = qkv.reshape(B, S, 3 * inner)

        # Heads are sliced out of qkv inside the kernel via BlockSpec index maps:
        # no 'b n (h d) -> (b h) n d' transposes (no extra HBM round trips).
        o = attention_core_pallas(qkv, H, D, self.scale)       # [B, S, H*D]

        if self.project_out:
            y = linear_pallas(o.reshape(B * S, inner), self.w_out_p, self.b_out_p,
                              self.n_out)
            return y.reshape(B, S, self.dim)
        return o


def _reference_attention(x, module):
    B, S, _ = x.shape
    H, D = module.heads, module.head_dim
    hp = jax.lax.Precision.HIGHEST
    qkv = jnp.matmul(x, module.w_qkv, precision=hp)
    q, k, v = jnp.split(qkv, 3, axis=-1)

    def rh(t):
        return t.reshape(B, S, H, D).transpose(0, 2, 1, 3)

    q, k, v = rh(q), rh(k), rh(v)
    dots = jnp.einsum("bhnd,bhmd->bhnm", q, k, precision=hp) * module.scale
    attn = jax.nn.softmax(dots, axis=-1)
    out = jnp.einsum("bhnm,bhmd->bhnd", attn, v, precision=hp)
    out = out.transpose(0, 2, 1, 3).reshape(B, S, H * D)
    if module.project_out:
        out = jnp.matmul(out, module.w_out, precision=hp) + module.b_out
    return out


if __name__ == "__main__":
    key = jax.random.PRNGKey(0)
    k_x, k_params = jax.random.split(key)

    B, S, dim = 2, 8, 32          # batch, seq, hidden
    heads, head_dim = 8, 64       # module defaults

    x = jax.random.normal(k_x, (B, S, dim), dtype=jnp.float32)
    module = AttentionPallas(dim, heads=heads, head_dim=head_dim, key=k_params)

    out = jax.block_until_ready(module(x))
    assert out.shape == (B, S, dim), out.shape

    ref = _reference_attention(x, module)
    err = float(jnp.max(jnp.abs(out - ref)))
    assert jnp.allclose(out, ref, atol=1e-2, rtol=1e-2), (
        "mismatch vs reference, max abs err = " + str(err))

    print("KERNEL_OK")
</pallas_src>

<mosaic_0001>
module attributes {stable_mosaic.version = 11 : i64} {
  func.func @_linear_kernel(%arg0: i32, %arg1: i32, %arg2: i32, %arg3: memref<16x32xf32, #tpu.memory_space<vmem>>, %arg4: memref<32x512xf32, #tpu.memory_space<vmem>>, %arg5: memref<1x512xf32, #tpu.memory_space<vmem>>, %arg6: memref<16x512xf32, #tpu.memory_space<vmem>>, %arg7: memref<16x512xf32, #tpu.memory_space<vmem>>) attributes {dimension_semantics = [#tpu.dimension_semantics<parallel>, #tpu.dimension_semantics<parallel>, #tpu.dimension_semantics<arbitrary>], iteration_bounds = array<i64: 1, 3, 1>, scalar_prefetch = 0 : i64, scratch_operands = 1 : i64, tpu.core_type = #tpu.core_type<tc>, window_params = [{transform_indices = @transform_0, window_bounds = array<i64: 16, 32>}, {transform_indices = @transform_1, window_bounds = array<i64: 32, 512>}, {transform_indices = @transform_2, window_bounds = array<i64: 1, 512>}, {transform_indices = @transform_3, window_bounds = array<i64: 16, 512>}]} {
    %c0_i32 = arith.constant 0 : i32
    %0 = arith.cmpi eq, %arg2, %c0_i32 : i32
    %1 = arith.extui %0 : i1 to i32
    %c0_i32_0 = arith.constant 0 : i32
    %2 = arith.cmpi ne, %1, %c0_i32_0 : i32
    scf.if %2 {
      %cst_10 = arith.constant 0.000000e+00 : f32
      %12 = vector.broadcast %cst_10 : f32 to vector<16x512xf32>
      %c0_11 = arith.constant 0 : index
      %c0_12 = arith.constant 0 : index
      %13 = vector.load %arg7[%c0_11, %c0_12] : memref<16x512xf32, #tpu.memory_space<vmem>>, vector<16x512xf32>
      tpu.vector_store %arg7[%c0_11, %c0_12], %12 {strides = array<i32>} : memref<16x512xf32, #tpu.memory_space<vmem>>, vector<16x512xf32>,
    } else {
    }
    %c0 = arith.constant 0 : index
    %c0_1 = arith.constant 0 : index
    %3 = vector.load %arg7[%c0, %c0_1] : memref<16x512xf32, #tpu.memory_space<vmem>>, vector<16x512xf32>
    %c0_2 = arith.constant 0 : index
    %c0_3 = arith.constant 0 : index
    %4 = vector.load %arg3[%c0_2, %c0_3] : memref<16x32xf32, #tpu.memory_space<vmem>>, vector<16x32xf32>
    %c0_4 = arith.constant 0 : index
    %c0_5 = arith.constant 0 : index
    %5 = vector.load %arg4[%c0_4, %c0_5] : memref<32x512xf32, #tpu.memory_space<vmem>>, vector<32x512xf32>
    %cst = arith.constant dense<0.000000e+00> : vector<16x512xf32>
    %6 = tpu.matmul %4, %5, %cst {dimension_numbers = #tpu.dot_dimension_numbers<[1], [0], [0], [1], [0, 0, 1, 1], [], []>} : vector<16x32xf32>, vector<32x512xf32>, vector<16x512xf32> -> vector<16x512xf32>
    %7 = arith.addf %3, %6 : vector<16x512xf32>
    %c0_6 = arith.constant 0 : index
    %c0_7 = arith.constant 0 : index
    %8 = vector.load %arg7[%c0_6, %c0_7] : memref<16x512xf32, #tpu.memory_space<vmem>>, vector<16x512xf32>
    tpu.vector_store %arg7[%c0_6, %c0_7], %7 {strides = array<i32>} : memref<16x512xf32, #tpu.memory_space<vmem>>, vector<16x512xf32>,
    %c0_i32_8 = arith.constant 0 : i32
    %9 = arith.cmpi eq, %arg2, %c0_i32_8 : i32
    %10 = arith.extui %9 : i1 to i32
    %c0_i32_9 = arith.constant 0 : i32
    %11 = arith.cmpi ne, %10, %c0_i32_9 : i32
    scf.if %11 {
      %c0_10 = arith.constant 0 : index
      %c0_11 = arith.constant 0 : index
      %12 = vector.load %arg7[%c0_10, %c0_11] : memref<16x512xf32, #tpu.memory_space<vmem>>, vector<16x512xf32>
      %c0_12 = arith.constant 0 : index
      %c0_13 = arith.constant 0 : index
      %13 = vector.load %arg5[%c0_12, %c0_13] : memref<1x512xf32, #tpu.memory_space<vmem>>, vector<1x512xf32>
      %14 = vector.broadcast %13 : vector<1x512xf32> to vector<16x512xf32>
      %15 = arith.addf %12, %14 : vector<16x512xf32>
      %c0_14 = arith.constant 0 : index
      %c0_15 = arith.constant 0 : index
      %16 = vector.load %arg6[%c0_14, %c0_15] : memref<16x512xf32, #tpu.memory_space<vmem>>, vector<16x512xf32>
      tpu.vector_store %arg6[%c0_14, %c0_15], %15 {strides = array<i32>} : memref<16x512xf32, #tpu.memory_space<vmem>>, vector<16x512xf32>,
    } else {
    }
    return
  }
  func.func @transform_0(%arg0: i32, %arg1: i32, %arg2: i32) -> (i32, i32) {
    %c0_i32 = arith.constant 0 : i32
    return %arg0, %arg2 : i32, i32
  }
  func.func @transform_1(%arg0: i32, %arg1: i32, %arg2: i32) -> (i32, i32) {
    %c0_i32 = arith.constant 0 : i32
    return %arg2, %arg1 : i32, i32
  }
  func.func @transform_2(%arg0: i32, %arg1: i32, %arg2: i32) -> (i32, i32) {
    %c0_i32 = arith.constant 0 : i32
    %c0_i32_0 = arith.constant 0 : i32
    return %c0_i32, %arg1 : i32, i32
  }
  func.func @transform_3(%arg0: i32, %arg1: i32, %arg2: i32) -> (i32, i32) {
    %c0_i32 = arith.constant 0 : i32
    return %arg0, %arg1 : i32, i32
  }
}

</mosaic_0001>

<bundles_post_ra>
// kernel: tpu_custom_call.1
= control target key start
LH: loop header
LB: loop body
LE: loop exit
PB: predicated region body
PF: predicated region fallthrough
CT: control target
= control target key end

     0   :  { %s1304_s0 = inlined_call_operand.hbm [shape: f32[16,32], index: 0, kind: input, shape index: {}]   ;;  %s1305_s1 = inlined_call_operand.hbm [shape: f32[32,1536], index: 1, kind: input, shape index: {}]   ;;  %s1306_s2 = inlined_call_operand.hbm [shape: f32[1,1536], index: 2, kind: input, shape index: {}]   ;;  %s1307_s3 = inlined_call_operand.hbm [shape: f32[16,1536], index: 3, kind: output, shape index: {}]  }
   0x1   :  { %1316 = sst [smem:[#allocation14_spill]] %s1305_s1 }
   0x2   :  { %8 = vsyncpa [#allocation4], 0 }
   0x3   :  { %9 = vsyncpa [#allocation7], 0 }
   0x4   :  { %11 = vsyncpa [#allocation7 + $0x1], 0 }
   0x5   :  { %12 = vsyncpa [#allocation5], 0 }
   0x6   :  { %14 = vsyncpa [#allocation5 + $0x1], 0  ;;  %s1029_s12 = smov 0   ;;  %s1031_s13 = smov 0  }
   0x7   :  { %s1033_s14 = smov 0   ;;  %s1035_s15 = smov 0  }
   0x8   :  { %s1037_s16 = smov 0   ;;  %s1039_s17 = smov 0  }
   0x9 LB: > { %s35_s18 = sadd.s32 1, %s990_s16  ;;  %s76_s19 = sadd.s32 1, %s982_s14  ;;  %s994_s17 = sphi %s1039_s17, %s20_s17   ;;  %s990_s16 = sphi %s1037_s16, %s1339_s16   ;;  %s986_s15 = sphi %s1035_s15, %s1338_s15   ;;  %s982_s14 = sphi %s1033_s14, %s1337_s14   ;;  %s978_s13 = sphi %s1031_s13, %s1336_s13   ;;  %s974_s12 = sphi %s1029_s12, %s1335_s12  }
   0xa   : > { %p37_p0 = scmp.ge.s32.totalorder %s35_s18, 3  ;;  %p83_p1 = scmp.ne.s32.totalorder %s982_s14, %s978_s13 }
   0xb   : > { %p84_p2 = scmp.eq.s32.totalorder %s994_s17, 0  ;;  %p759_p4 = scmp.lt.s32.totalorder %s994_s17, 3 }
   0xc   : > { %s1341_s18 = smov (%p37_p0, %s35_s18), 0  ;;  %s184_s21 = sand.u32 1, %s994_s17  }
   0xd   : > { %1317 = sst [smem:[#allocation13_spill]] %s1341_s18  ;;  %p85_p3 = por %p84_p2, %p83_p1 }
   0xe   : > { %s72_s20 = ssub.s32 %s990_s16, %s1341_s18  ;;  %s186_s22 = sand.u32 1, %s982_s14  }
   0xf   : > { %p74_p5 = scmp.eq.s32.totalorder %s72_s20, 0  ;;  %s714_s23 = sshll.u32 %s990_s16, 9 }
  0x10   : > { %s694_s25 = sshll.u32 %s186_s22, 7  ;;  %s1318_s1 = sld [smem:[#allocation14_spill]] }
  0x11   : > { %s1076_s24 = scalar_select %p74_p5, %s982_s14, %s76_s19  }
  0x12   : > { %p1085_p6 = pnand %p759_p4, %p85_p3  ;;  %s188_s30 = scalar_lea.vmem [#allocation6], %s694_s25 }
  0x13   : > { %s198_s4 = sshll.u32 %s188_s30, 4  ;;  %s1091_s5 = scalar_lea.sflag [#allocation7], %s184_s21  ;;  %s1089_s4 = int_to_ptr.vmem [resolvable:$true] %s198_s4 }
  0x14   : > { %s1319_s29 = scalar_select %p1085_p6, 1, 0 }
  0x15   : > { %p1310_p8 = pneg %p1085_p6 }
  0x16   : > { %s1083_s28 = scalar_lea.hbm %s1318_s1, %s714_s23  ;;  %s825_s9 = scalar_lea.hbm %s1318_s1, 6144 }
  0x17   : > { %s820_s6 = scalar_lea.hbm %s1083_s28, 2048  ;;  %p826_p11 = scmp.lt.u32.totalorder %s1083_s28, %s1318_s1 }
  0x18   : > { %p821_p7 = scmp.ne.s32.totalorder %s1083_s28, %s820_s6  ;;  %p827_p12 = scmp.lt.u32.totalorder %s825_s9, %s820_s6 }
  0x19   : > { %p829_p0 = scmp.lt.u32.totalorder %s820_s6, %s1083_s28 }
  0x1a   : > { %p823_p9 = pnand %p1310_p8, %p821_p7  ;;  %p828_p13 = por %p827_p12, %p826_p11 }
  0x1c   : > { %p824_p10 = pneg %p823_p9  ;;  %p830_p2 = por %p829_p0, %p828_p13 }
  0x1e   : > { %p831_p3 = pnand %p830_p2, %p824_p10 }
  0x20   : > { %834 = shalt.err (!%p831_p3)
}
  0x21   : > { %s835_s19 = scalar_lea.vmem %s1089_s4, 2048  ;;  %s996_s20 = smov [#allocation6]  }
  0x22   : > { %p836_p4 = scmp.ne.s32.totalorder %s1089_s4, %s835_s19  ;;  %s840_s21 = sshll.u32 %s996_s20, 4  ;;  %s841_s21 = int_to_ptr.vmem [resolvable:$false] %s840_s21 }
  0x23   : > { %s842_s23 = scalar_lea.vmem %s841_s21, 4096  ;;  %p843_p9 = scmp.lt.s32.totalorder %s1089_s4, %s841_s21 }
  0x24   : > { %p838_p5 = pnand %p836_p4, %p1310_p8  ;;  %p844_p11 = scmp.lt.s32.totalorder %s842_s23, %s835_s19 }
  0x26   : > { %p839_p7 = pneg %p838_p5  ;;  %p845_p12 = por %p844_p11, %p843_p9 }
  0x28   : > { %p846_p13 = pnand %p845_p12, %p839_p7 }
  0x2a   : > { %849 = shalt.err (!%p846_p13)
}
  0x2b   : > { %s997_s25 = smov 1536   ;;  %s998_s26 = smov 512  }
  0x2c   : > { %s999_s27 = smov 32   ;;  %s1120_s30 = sadd.s32 4294967295, %s994_s17  }
  0x2d   : > { %750 = dma.hbm_to_vmem [thread:$0]  (!%p1085_p6), %s1083_s28, 2048, %s1089_s4, %s1091_s5, %s997_s25, %s998_s26, %s999_s27  }
  0x2e   : > { %s690_s6 = sadd.s32 4294967294, %s994_s17   ;;  %p89_p10 = scmp.ne.s32.totalorder %s978_s13, %s974_s12 }
  0x2f   : > { %p1309_p0 = scmp.eq.s32.totalorder %s1120_s30, 0  ;;  %p141_p2 = scmp.eq.s32.totalorder %s1120_s30, 2 }
  0x30   : > { %p147_p3 = scmp.eq.s32.totalorder %s690_s6, 2  ;;  %p691_p5 = scmp.ge.s32.totalorder %s994_s17, 1 }
  0x31   : > { %p1129_p4 = por %p1309_p0, %p89_p10  ;;  %p1137_p7 = por %p141_p2, %p83_p1 }
  0x32   : > { %p1141_p9 = por %p147_p3, %p89_p10  ;;  %p154_p11 = scmp.lt.s32.totalorder %s994_s17, 4 }
  0x33   : > { %s1320_s7 = scalar_select %p1129_p4, 1, 0 }
  0x34   : > { %s1321_s28 = scalar_select %p1137_p7, 1, 0 }
  0x35   : > { %s1322_s4 = scalar_select %p1141_p9, 1, 0 }
  0x36   : > { %p1146_p12 = pnand %p691_p5, %p154_p11  ;;  %s1000_s9 = smov [#allocation3]  }
  0x37   : > { %s170_s10 = sshll.u32 %s1000_s9, 4  ;;  %s697_s11 = sshll.u32 %s186_s22, 2  ;;  %s1150_s10 = int_to_ptr.vmem [resolvable:$true] %s170_s10 }
  0x38   : > { %s1323_s8 = scalar_select %p1146_p12, 1, 0 }
  0x39   : > { %p743_p13 = pneg %p1146_p12  ;;  %s715_s19 = sshll.u32 %s990_s16, 6 }
  0x3a   : > { %s1166_s25 = scalar_lea.hbm %s1306_s2, %s715_s19  ;;  %s212_s26 = scalar_lea.vmem [#allocation8], %s697_s11 }
  0x3b   : > { %p1159_p1 = pnand %p743_p13, %p1309_p0  ;;  %s220_s27 = sshll.u32 %s212_s26, 4  ;;  %s1168_s27 = int_to_ptr.vmem [resolvable:$true] %s220_s27 }
  0x3c   : > { %s850_s22 = scalar_lea.hbm %s1304_s0, 256 }
  0x3d   : > { %p851_p10 = scmp.ne.s32.totalorder %s1304_s0, %s850_s22  ;;  %p852_p2 = pneg %p1159_p1 }
  0x3e   : > { %p857_p11 = scmp.lt.u32.totalorder %s850_s22, %s1304_s0 }
  0x3f   : > { %p853_p3 = pnand %p852_p2, %p851_p10 }
  0x41   : > { %p854_p5 = pneg %p853_p3 }
  0x43   : > { %p859_p13 = pnand %p857_p11, %p854_p5 }
  0x45   : > { %862 = shalt.err (!%p859_p13)
}
  0x46   : > { %s863_s11 = scalar_lea.vmem %s1150_s10, 256  ;;  %p871_p7 = scmp.lt.s32.totalorder %s1150_s10, %s1150_s10 }
  0x47   : > { %p864_p0 = scmp.ne.s32.totalorder %s1150_s10, %s863_s11  ;;  %p872_p4 = scmp.lt.s32.totalorder %s863_s11, %s863_s11 }
  0x49   : > { %p866_p8 = pnand %p864_p0, %p852_p2  ;;  %p873_p12 = por %p872_p4, %p871_p7 }
  0x4b   : > { %p867_p9 = pneg %p866_p8 }
  0x4d   : > { %p874_p6 = pnand %p873_p12, %p867_p9 }
  0x4f   : > { %877 = shalt.err (!%p874_p6)
}
  0x50   : > { %s1001_s1 = smov 128   ;;  %s1002_s18 = smov 8  }
  0x51   : > { %746 = dma.hbm_to_vmem [thread:$0]  (!%p1159_p1), %s1304_s0, 256, %s1150_s10, [#allocation4], %s1001_s1, %s1001_s1, %s1002_s18  }
  0x52   : > { %s878_s6 = scalar_lea.hbm %s1166_s25, 64  ;;  %p1325_p0 = scmp.ne.s32.totalorder %s1319_s29, 0 }
  0x53   : > { %p879_p8 = scmp.ne.s32.totalorder %s1166_s25, %s878_s6  ;;  %s883_s21 = scalar_lea.hbm %s1306_s2, 192 }
  0x54   : > { %p1326_p4 = pneg %p1325_p0  ;;  %p884_p9 = scmp.lt.u32.totalorder %s1166_s25, %s1306_s2 }
  0x55   : > { %p885_p12 = scmp.lt.u32.totalorder %s883_s21, %s878_s6  ;;  %p887_p2 = scmp.lt.u32.totalorder %s878_s6, %s1166_s25 }
  0x56   : > { %p881_p7 = pnand %p879_p8, %p1326_p4 }
  0x57   : > { %p886_p10 = por %p885_p12, %p884_p9 }
  0x58   : > { %p882_p6 = pneg %p881_p7 }
  0x59   : > { %p888_p3 = por %p887_p2, %p886_p10 }
  0x5b   : > { %p889_p5 = pnand %p888_p3, %p882_p6 }
  0x5d   : > { %892 = shalt.err (!%p889_p5)
}
  0x5e   : > { %s893_s10 = scalar_lea.vmem %s1168_s27, 64  ;;  %p1327_p11 = pmov %p1326_p4 }
  0x5f   : > { %p894_p1 = scmp.ne.s32.totalorder %s1168_s27, %s893_s10  ;;  %s1003_s20 = smov [#allocation8]  }
  0x60   : > { %s898_s1 = sshll.u32 %s1003_s20, 4  ;;  %s899_s1 = int_to_ptr.vmem [resolvable:$false] %s898_s1 }
  0x61   : > { %p896_p13 = pnand %p894_p1, %p1327_p11  ;;  %s900_s18 = scalar_lea.vmem %s899_s1, 128 }
  0x62   : > { %p901_p4 = scmp.lt.s32.totalorder %s1168_s27, %s899_s1  ;;  %p902_p7 = scmp.lt.s32.totalorder %s900_s18, %s893_s10 }
  0x63   : > { %p897_p8 = pneg %p896_p13 }
  0x64   : > { %p903_p9 = por %p902_p7, %p901_p4 }
  0x66   : > { %p904_p12 = pnand %p903_p9, %p897_p8 }
  0x68   : > { %907 = shalt.err (!%p904_p12)
}
  0x69   : > { %753 = dma.hbm_to_vmem [thread:$0]  (!%p1325_p0), %s1166_s25, 64, %s1168_s27, %s1091_s5  }
  0x6a   : > { %p1328_p6 = scmp.ne.s32.totalorder %s1323_s8, 0 }
  0x6b   : > { %p1329_p10 = scmp.eq.s32.totalorder (!%p1328_p6), %s1120_s30, 0 }
  0x6c   : > { %229 = sbr.rel (%p1328_p6) target bundleno = 369 (0x171), region = 32 }
  0x73   : > { %961 = dma.done.wait (%p1329_p10), [#allocation4], 256   ;;  %p1330_p2 = pmov %p1329_p10 }
  0x74   : > { %s235_s19 = sand.u32 1, %s1120_s30   ;;  %s1223_s26 = sand.u32 1, %s978_s13  }
  0x75   : > { %963 = vsyncadd (%p1330_p2), [#allocation4], 4294967040  ;;  %s702_s29 = sshll.u32 %s1223_s26, 7  ;;  %s236_s6 = scalar_lea.sflag [#allocation7], %s235_s19 }
  0x76   : > { %s1226_s9 = scalar_lea.vmem [#allocation6], %s702_s29  ;;  %p1331_p0 = scmp.ne.s32.totalorder %s1320_s7, 0 }
  0x78   : > { %965 = dma.done.wait (%p1331_p0), %s236_s6, 2112  }
  0x79   : > { %967 = vsyncadd (%p1331_p0), %s236_s6, 4294965184  ;;  %v1004_v0 = vmov 0.0   ;;  %v305_v1 = vld [vmem:[%s1226_s9 + $0x8] sm:$0xff]  ;;  %v307_v3 = vld [vmem:[%s1226_s9 + $0x18] sm:$0xff]  ;;  %vm320_vm0 = vcmask 261120   ;;  %v510_v27 = vlaneseq  ;;  %s703_s5 = sshll.u32 %s1223_s26, 2 }
  0x7a   : > { %391 = vmatprep.mubr.f32.mxu0 %v1004_v0  ;;  %468 = vmatprep.mubr.f32.mxu1 %v1004_v0  ;;  %v309_v2 = vld [vmem:[%s1226_s9 + $0x28] sm:$0xff]  ;;  %v311_v5 = vld [vmem:[%s1226_s9 + $0x38] sm:$0xff]  ;;  %v304_v6 = vld [vmem:[%s1226_s9] sm:$0xff]  ;;  %s248_s30 = scalar_lea.vmem [#allocation8], %s703_s5  ;;  %s704_s7 = sshll.u32 %s1223_s26, 6 }
  0x7b   : > { %v717_v4 = vpack.c.bf16 %v309_v2, %v305_v1  ;;  %v308_v7 = vld [vmem:[%s1226_s9 + $0x20] sm:$0xff]  ;;  %v725_v8 = vpack.c.bf16 %v311_v5, %v307_v3  ;;  %v306_v10 = vld [vmem:[%s1226_s9 + $0x10] sm:$0xff]  ;;  %v313_v12 = vld [vmem:[%s1226_s9 + $0x48] sm:$0xff]  ;;  %v511_v28 = vshrl.u32 %v510_v27, 7  ;;  %s275_s8 = scalar_lea.vmem [#allocation9], %s704_s7  ;;  %s716_s27 = sshll.u32 %s986_s15, 9 }
  0x7c   : > { %v719_v9 = vpack.c.bf16 %v308_v7, %v304_v6  ;;  %v310_v11 = vld [vmem:[%s1226_s9 + $0x30] sm:$0xff]  ;;  %v317_v14 = vld [vmem:[%s1226_s9 + $0x68] sm:$0xff]  ;;  %v315_v15 = vld [vmem:[%s1226_s9 + $0x58] sm:$0xff]  ;;  %s563_s25 = sshll.u32 %s275_s8, 4  ;;  %s1256_s15 = scalar_lea.hbm %s1307_s3, %s716_s27  ;;  %s1251_s25 = int_to_ptr.vmem [resolvable:$true] %s563_s25 }
  0x7d   : > { %718 = vmatprep.subr.bf16.mxu0 %v717_v4  ;;  %v727_v13 = vpack.c.bf16 %v310_v11, %v306_v10  ;;  %v319_v16 = vld [vmem:[%s1226_s9 + $0x78] sm:$0xff]  ;;  %726 = vmatprep.subr.bf16.mxu1 %v725_v8  ;;  %v721_v17 = vpack.c.bf16 %v317_v14, %v313_v12  ;;  %v312_v19 = vld [vmem:[%s1226_s9 + $0x40] sm:$0xff]  ;;  %v314_v21 = vld [vmem:[%s1226_s9 + $0x50] sm:$0xff]  ;;  %v512_v29 = vsub.s32 0, %v511_v28  ;;  %v520_v31 = vsub.s32 2, %v511_v28  ;;  %s547_s23 = scalar_lea.sflag [#allocation5], %s1223_s26 }
  0x7e   : > { %720 = vmatpush1.bf16.msra.mxu0 %v719_v9  ;;  %v729_v18 = vpack.c.bf16 %v319_v16, %v315_v15  ;;  %v316_v20 = vld [vmem:[%s1226_s9 + $0x60] sm:$0xff]  ;;  %v318_v23 = vld [vmem:[%s1226_s9 + $0x70] sm:$0xff]  ;;  %v303_v26 = vld [vmem:[#allocation3 + $0x8] sm:$0xff]  ;;  %v516_v32 = vsub.s32 1, %v511_v28  ;;  %v524_v33 = vsub.s32 3, %v511_v28  ;;  %s908_s11 = scalar_lea.vmem %s1251_s25, 1024 }
  0x7f   : > { %728 = vmatpush1.bf16.msra.mxu1 %v727_v13  ;;  %v723_v22 = vpack.c.bf16 %v316_v20, %v312_v19  ;;  %722 = vmatprep.subr.bf16.mxu0 %v721_v17  ;;  %v731_v24 = vpack.c.bf16 %v318_v23, %v314_v21  ;;  %v302_v25 = vld [vmem:[#allocation3] sm:$0xff]  ;;  %v508_v30 = vld [vmem:[%s248_s30] sm:$0xf]  ;;  %p909_p3 = scmp.ne.s32.totalorder %s1251_s25, %s908_s11  ;;  %p1332_p5 = scmp.ne.s32.totalorder %s1321_s28, 0 }
  0x80   : > { %730 = vmatprep.subr.bf16.mxu1 %v729_v18  ;;  %v513_v34 = vrot.slane %v508_v30, %v512_v29  ;;  %v521_v35 = vrot.slane %v508_v30, %v520_v31  ;;  %v517_v36 = vrot.slane %v508_v30, %v516_v32  ;;  %v525_v37 = vrot.slane %v508_v30, %v524_v33  ;;  %s1005_s10 = smov [#allocation9]  }
  0x81   : > { %p910_p1 = pnand %p909_p3, %p1332_p5  ;;  %s912_s20 = sshll.u32 %s1005_s10, 4  ;;  %s913_s20 = int_to_ptr.vmem [resolvable:$false] %s912_s20 }
  0x82   : > { %724 = vmatpush1.bf16.msra.mxu0 %v723_v22  ;;  %s914_s1 = scalar_lea.vmem %s913_s20, 2048  ;;  %p915_p13 = scmp.lt.s32.totalorder %s1251_s25, %s913_s20 }
  0x83   : > { %732 = vmatpush1.bf16.msra.mxu1 %v731_v24  ;;  %p911_p11 = pneg %p910_p1  ;;  %p916_p8 = scmp.lt.s32.totalorder %s914_s1, %s908_s11 }
  0x85   : > { %705 = vmatmul.mubr.msk.f32.vlgmr.msra.gmra.mrb[0].mxu0 %vm320_vm0, %v302_v25  ;;  %p917_p4 = por %p916_p8, %p915_p13 }
  0x86   : > { %707 = vmatmul.mubr.msk.f32.vlgmr.msra.gmra.mrb[0].mxu1 %vm320_vm0, %v302_v25  ;;  %397 = vmatprep.mubr.f32.mxu0 %v1004_v0 }
  0x87   : > { %474 = vmatprep.mubr.f32.mxu1 %v1004_v0  ;;  %p918_p7 = pnand %p917_p4, %p911_p11 }
  0x89   : > { %706 = vmatmul.mubr.msk.f32.gmra.mrb[2].mxu0 %vm320_vm0, %v303_v26 }
  0x8a   : > { %708 = vmatmul.mubr.msk.f32.gmra.mrb[2].mxu1 %vm320_vm0, %v303_v26 }
 0x158   : > { %v393_v38 = vpop.f32.mrb[0].mxu0 }
 0x159   : > { %v530_v39 = vadd.f32 %v513_v34, %v393_v38  ;;  %v470_v40 = vpop.f32.mrb[0].mxu1  ;;  %v395_v41 = vpop.f32.mrb[1].mxu0 }
 0x15a   : > { %v532_v42 = vadd.f32 %v521_v35, %v470_v40  ;;  %v531_v43 = vadd.f32 %v517_v36, %v395_v41  ;;  %v472_v44 = vpop.f32.mrb[1].mxu1 }
 0x15b   : > { %538 = vst [vmem:[%s275_s8] sm:$0xff] %v530_v39  ;;  %v533_v45 = vadd.f32 %v525_v37, %v472_v44 }
 0x15c   : > { %540 = vst [vmem:[%s275_s8 + $0x10] sm:$0xff] %v532_v42  ;;  %539 = vst [vmem:[%s275_s8 + $0x8] sm:$0xff] %v531_v43  ;;  %v399_v46 = vpop.f32.mrb[2].mxu0 }
 0x15d   : > { %541 = vst [vmem:[%s275_s8 + $0x18] sm:$0xff] %v533_v45  ;;  %v534_v47 = vadd.f32 %v513_v34, %v399_v46  ;;  %v476_v48 = vpop.f32.mrb[2].mxu1  ;;  %v401_v49 = vpop.f32.mrb[3].mxu0 }
 0x15e   : > { %v536_v50 = vadd.f32 %v521_v35, %v476_v48  ;;  %v535_v51 = vadd.f32 %v517_v36, %v401_v49  ;;  %v478_v52 = vpop.f32.mrb[3].mxu1 }
 0x15f   : > { %542 = vst [vmem:[%s275_s8 + $0x20] sm:$0xff] %v534_v47  ;;  %v537_v53 = vadd.f32 %v525_v37, %v478_v52 }
 0x160   : > { %544 = vst [vmem:[%s275_s8 + $0x30] sm:$0xff] %v536_v50  ;;  %543 = vst [vmem:[%s275_s8 + $0x28] sm:$0xff] %v535_v51 }
 0x161   : > { %545 = vst [vmem:[%s275_s8 + $0x38] sm:$0xff] %v537_v53 }
 0x162   : > { %921 = shalt.err (!%p918_p7)
}
 0x163   : > { %s922_s18 = scalar_lea.hbm %s1256_s15, 1024  ;;  %s926_s6 = scalar_lea.hbm %s1307_s3, 3072 }
 0x164   : > { %p923_p9 = scmp.ne.s32.totalorder %s1256_s15, %s922_s18  ;;  %p927_p10 = scmp.lt.u32.totalorder %s1256_s15, %s1307_s3 }
 0x165   : > { %p928_p2 = scmp.lt.u32.totalorder %s926_s6, %s922_s18  ;;  %p930_p3 = scmp.lt.u32.totalorder %s922_s18, %s1256_s15 }
 0x166   : > { %p924_p12 = pnand %p923_p9, %p1332_p5 }
 0x167   : > { %p929_p0 = por %p928_p2, %p927_p10 }
 0x168   : > { %p925_p6 = pneg %p924_p12 }
 0x169   : > { %p931_p1 = por %p930_p3, %p929_p0 }
 0x16b   : > { %p932_p11 = pnand %p931_p1, %p925_p6 }
 0x16d   : > { %935 = shalt.err (!%p932_p11)
}
 0x16e   : > { %s1006_s30 = smov 512   ;;  %s1007_s7 = smov 1536  }
 0x16f   : > { %s1008_s8 = smov 32  }
 0x170   : > { %741 = dma.vmem_to_hbm [thread:$0]  (%p1332_p5), %s1251_s25, 1024, %s1256_s15, %s547_s23, %s1006_s30, %s1007_s7, %s1008_s8  }
 0x171 PF: > { %p761_p13 = scmp.ge.s32.totalorder %s994_s17, 2  ;;  %s578_s27 = sand.u32 1, %s974_s12  }
 0x172   : > { %p1333_p8 = scmp.ne.s32.totalorder %s1322_s4, 0  ;;  %s579_s22 = scalar_lea.sflag [#allocation5], %s578_s27 }
 0x174   : > { %p755_p4 = pnand %p761_p13, %p1333_p8 }
 0x176   : > { %969 = dma.done.wait (!%p755_p4), %s579_s22, 1024  }
 0x177   : > { %971 = vsyncadd (!%p755_p4), %s579_s22, 4294966272  ;;  %s20_s17 = sadd.s32 1, %s994_s17   ;;  %s1334_s28 = sld [smem:[#allocation13_spill]] }
 0x178   : > { %p17_p7 = scmp.ge.s32.totalorder %s20_s17, 5   ;;  %s1335_s12 = smov %s978_s13 }
 0x179   : > { %s1336_s13 = smov %s982_s14  ;;  %s1337_s14 = smov %s1076_s24 }
 0x17a   : > { %s1338_s15 = smov %s990_s16  ;;  %19 = sbr.rel (!%p17_p7) target bundleno = 9 (0x9), region = 102 }
 0x17d   : > { %s1339_s16 = smov %s1334_s28 }
 0x181   :  { %584 = vsyncpa [#allocation4], 1 }
 0x182   :  { %586 = vsyncpa [#allocation4 + $0x1], 1 }
 0x183   :  { %587 = vsyncpa [#allocation7], 1 }
 0x184   :  { %589 = vsyncpa [#allocation7 + $0x1], 1 }
 0x185   :  { %590 = vsyncpa [#allocation5], 1 }
 0x186   :  { %592 = vsyncpa [#allocation5 + $0x1], 1 }

</bundles_post_ra>
